<compile_context>
chip_gen: v7x
topology: tpu7x:2x2x1
jax: 0.10.0
libtpu: 0.0.40
codegen_flags: <defaults>
</compile_context>

<pallas_src>
import jax
import jax.numpy as jnp
from jax.experimental import pallas as pl
from jax.experimental.pallas import tpu as pltpu

IN_FEATURES = 78
OUT_FEATURES = 78
PADDED = 128          # lane-dense feature dim for the MXU
NUM_LAYERS = 4


def _round_up(n, m):
    return ((n + m - 1) // m) * m


def _cdiv(a, b):
    return (a + b - 1) // b


def gen_fl_kernel(x_ref, w_ref, b_ref, out_ref, xpad_ref):
    """x_ref: (TM, 78); w_ref: (4, 128, 128) bf16; b_ref: (4, 1, 128) f32;
    out_ref: (TM, 78); xpad_ref: (TM, 128) bf16 VMEM scratch."""
    # In-kernel 78 -> 128 lane pad (replaces a separate XLA pad pass over HBM).
    # Zero the whole scratch every step (cheap VPU/vst filler) so pad columns
    # are zero regardless of how the grid is partitioned across cores.
    xpad_ref[...] = jnp.zeros_like(xpad_ref)
    xpad_ref[:, :IN_FEATURES] = x_ref[...].astype(jnp.bfloat16)
    h16 = xpad_ref[...]                                   # (TM, 128) bf16

    h = None
    for layer in range(NUM_LAYERS):                       # statically unrolled
        acc = jnp.dot(h16, w_ref[layer],                  # MXU, f32 accumulate
                      preferred_element_type=jnp.float32)
        h = jnp.tanh(acc + b_ref[layer])                  # bias + tanh in f32 (EUP)
        h16 = h.astype(jnp.bfloat16)                      # single cast feeding next MXU

    # Padded columns 78..127 stay exactly zero through all layers
    # (zero weight rows/cols + zero biases -> tanh(0) = 0).
    out_ref[...] = h[:, :OUT_FEATURES].astype(out_ref.dtype)


def gen_fl_forward(x, w_stack, b_stack, *, tile_m=2048, out_dtype=None):
    """x: [B, 78] (f32 or bf16); w_stack: [4,128,128] bf16 (pre-transposed,
    zero-padded); b_stack: [4,1,128] f32 (zero-padded).

    Tip: pass x as bf16 and/or out_dtype=jnp.bfloat16 to halve HBM traffic on
    this memory-bound op; in-kernel math (bf16 MXU, f32 accumulate) is the same.
    """
    B = x.shape[0]
    assert x.shape[1] == IN_FEATURES
    out_dtype = x.dtype if out_dtype is None else out_dtype

    # Pad batch only to a multiple of 8 (sublane granularity); at most 7 rows.
    B8 = _round_up(B, 8)
    x_in = x if B8 == B else jnp.pad(x, ((0, B8 - B), (0, 0)))

    # Large tiles amortize the ~0.35us/step pipeline overhead; cap at ~B/4 for
    # big batches so the "parallel" axis has >=4 steps (uses both v7x TCs).
    TM = min(tile_m, B8)
    if B8 >= 1024:
        TM = min(TM, _round_up(_cdiv(B8, 4), 8))
    grid = (_cdiv(B8, TM),)

    itemsize = lambda dt: jnp.dtype(dt).itemsize
    cost = pl.CostEstimate(
        flops=2 * NUM_LAYERS * B8 * PADDED * PADDED,
        transcendentals=NUM_LAYERS * B8 * PADDED,
        bytes_accessed=(B8 * IN_FEATURES * itemsize(x.dtype)
                        + B8 * OUT_FEATURES * itemsize(out_dtype)
                        + w_stack.size * itemsize(w_stack.dtype)
                        + b_stack.size * itemsize(b_stack.dtype)),
    )

    out = pl.pallas_call(
        gen_fl_kernel,
        out_shape=jax.ShapeDtypeStruct((B8, OUT_FEATURES), out_dtype),
        grid=grid,
        in_specs=[
            # native 78-wide input blocks (last dim == full array extent)
            pl.BlockSpec((TM, IN_FEATURES), lambda i: (i, 0)),
            # weights / biases: constant-index blocks, VMEM-resident across steps
            pl.BlockSpec((NUM_LAYERS, PADDED, PADDED), lambda i: (0, 0, 0)),
            pl.BlockSpec((NUM_LAYERS, 1, PADDED), lambda i: (0, 0, 0)),
        ],
        out_specs=pl.BlockSpec((TM, OUT_FEATURES), lambda i: (i, 0)),
        scratch_shapes=[pltpu.VMEM((TM, PADDED), jnp.bfloat16)],
        compiler_params=pltpu.CompilerParams(
            dimension_semantics=("parallel",)),
        cost_estimate=cost,
    )(x_in, w_stack, b_stack)

    x_hat = out if B8 == B else out[:B]
    return {'x_input': x, 'x_latent': {'latent': None}, 'x_output': x_hat}


def init_params(key):
    """nn.Linear-style init. Returns list of (W_t [in,out] f32, b [out] f32)."""
    params = []
    bound = 1.0 / (IN_FEATURES ** 0.5)
    for _ in range(NUM_LAYERS):
        key, kw, kb = jax.random.split(key, 3)
        w_pt = jax.random.uniform(kw, (OUT_FEATURES, IN_FEATURES),
                                  dtype=jnp.float32, minval=-bound, maxval=bound)
        b = jax.random.uniform(kb, (OUT_FEATURES,),
                               dtype=jnp.float32, minval=-bound, maxval=bound)
        params.append((w_pt.T, b))
    return params


def pack_params(params):
    """Stack + zero-pad params into kernel-friendly arrays."""
    w_stack = jnp.zeros((NUM_LAYERS, PADDED, PADDED), dtype=jnp.float32)
    b_stack = jnp.zeros((NUM_LAYERS, 1, PADDED), dtype=jnp.float32)
    for i, (w, b) in enumerate(params):
        w_stack = w_stack.at[i, :IN_FEATURES, :OUT_FEATURES].set(w)
        b_stack = b_stack.at[i, 0, :OUT_FEATURES].set(b)
    # bf16 weights for the MXU; biases stay f32 (added post-accumulation).
    return w_stack.astype(jnp.bfloat16), b_stack


def _reference_bf16(x, params):
    h = x
    for (w, b) in params:
        h = jnp.tanh(jnp.dot(h.astype(jnp.bfloat16), w.astype(jnp.bfloat16),
                             preferred_element_type=jnp.float32) + b)
    return h


def _reference_f32(x, params):
    h = x
    for (w, b) in params:
        h = jnp.tanh(h @ w + b)
    return h


if __name__ == "__main__":
    key = jax.random.PRNGKey(0)
    params = init_params(key)
    w_stack, b_stack = pack_params(params)

    # (batch, tile_m): single-step, multi-step grid, and non-multiple-of-8 batch.
    for B, tile_m in [(8, 2048), (64, 16), (20, 2048)]:
        key, kx = jax.random.split(key)
        x = jax.random.normal(kx, (B, IN_FEATURES), dtype=jnp.float32)

        out = gen_fl_forward(x, w_stack, b_stack, tile_m=tile_m)
        x_hat = jax.block_until_ready(out['x_output'])
        assert x_hat.shape == (B, OUT_FEATURES)

        # Reference 1: same precision recipe (bf16 operands, f32 accumulate).
        ref = _reference_bf16(x, params)
        err = float(jnp.max(jnp.abs(x_hat - ref)))
        assert jnp.allclose(x_hat, ref, atol=2e-3, rtol=2e-3), (B, err)

        # Reference 2: full-f32 math -> loose (bf16 operand rounding).
        ref32 = _reference_f32(x, params)
        assert jnp.allclose(x_hat, ref32, atol=3e-2, rtol=3e-2)

    print("KERNEL_OK")
</pallas_src>

<mosaic_0001>
module attributes {stable_mosaic.version = 11 : i64} {
  func.func @gen_fl_kernel(%arg0: i32, %arg1: memref<8x78xf32, #tpu.memory_space<vmem>>, %arg2: memref<4x128x128xbf16, #tpu.memory_space<vmem>>, %arg3: memref<4x1x128xf32, #tpu.memory_space<vmem>>, %arg4: memref<8x78xf32, #tpu.memory_space<vmem>>, %arg5: memref<8x128xbf16, #tpu.memory_space<vmem>>) attributes {dimension_semantics = [#tpu.dimension_semantics<parallel>], iteration_bounds = array<i64: 1>, scalar_prefetch = 0 : i64, scratch_operands = 1 : i64, tpu.core_type = #tpu.core_type<tc>, window_params = [{transform_indices = @transform_0, window_bounds = array<i64: 8, 78>}, {pipeline_mode = #tpu.pipeline_mode<synchronous>, transform_indices = @transform_1, window_bounds = array<i64: 4, 128, 128>}, {pipeline_mode = #tpu.pipeline_mode<synchronous>, transform_indices = @transform_2, window_bounds = array<i64: 4, 1, 128>}, {transform_indices = @transform_3, window_bounds = array<i64: 8, 78>}]} {
    %cst = arith.constant 0.000000e+00 : bf16
    %0 = vector.broadcast %cst : bf16 to vector<8x128xbf16>
    %c0 = arith.constant 0 : index
    %c0_0 = arith.constant 0 : index
    %1 = vector.load %arg5[%c0, %c0_0] : memref<8x128xbf16, #tpu.memory_space<vmem>>, vector<8x128xbf16>
    tpu.vector_store %arg5[%c0, %c0_0], %0 {strides = array<i32>} : memref<8x128xbf16, #tpu.memory_space<vmem>>, vector<8x128xbf16>,
    %c0_1 = arith.constant 0 : index
    %c0_2 = arith.constant 0 : index
    %2 = vector.load %arg1[%c0_1, %c0_2] : memref<8x78xf32, #tpu.memory_space<vmem>>, vector<8x78xf32>
    %3 = arith.truncf %2 : vector<8x78xf32> to vector<8x78xbf16>
    %c0_3 = arith.constant 0 : index
    %c0_4 = arith.constant 0 : index
    %4 = vector.load %arg5[%c0_3, %c0_4] : memref<8x128xbf16, #tpu.memory_space<vmem>>, vector<8x78xbf16>
    tpu.vector_store %arg5[%c0_3, %c0_4], %3 {strides = array<i32>} : memref<8x128xbf16, #tpu.memory_space<vmem>>, vector<8x78xbf16>,
    %c0_5 = arith.constant 0 : index
    %c0_6 = arith.constant 0 : index
    %5 = vector.load %arg5[%c0_5, %c0_6] : memref<8x128xbf16, #tpu.memory_space<vmem>>, vector<8x128xbf16>
    %c0_7 = arith.constant 0 : index
    %c0_8 = arith.constant 0 : index
    %c0_9 = arith.constant 0 : index
    %6 = vector.load %arg2[%c0_7, %c0_8, %c0_9] : memref<4x128x128xbf16, #tpu.memory_space<vmem>>, vector<1x128x128xbf16>
    %7 = vector.shape_cast %6 : vector<1x128x128xbf16> to vector<128x128xbf16>
    %cst_10 = arith.constant dense<0.000000e+00> : vector<8x128xf32>
    %8 = tpu.matmul %5, %7, %cst_10 {dimension_numbers = #tpu.dot_dimension_numbers<[1], [0], [0], [1], [0, 0, 1, 1], [], []>} : vector<8x128xbf16>, vector<128x128xbf16>, vector<8x128xf32> -> vector<8x128xf32>
    %c0_11 = arith.constant 0 : index
    %c0_12 = arith.constant 0 : index
    %c0_13 = arith.constant 0 : index
    %9 = vector.load %arg3[%c0_11, %c0_12, %c0_13] : memref<4x1x128xf32, #tpu.memory_space<vmem>>, vector<1x1x128xf32>
    %10 = vector.shape_cast %9 : vector<1x1x128xf32> to vector<1x128xf32>
    %11 = vector.broadcast %10 : vector<1x128xf32> to vector<8x128xf32>
    %12 = arith.addf %8, %11 : vector<8x128xf32>
    %13 = math.tanh %12 : vector<8x128xf32>
    %14 = arith.truncf %13 : vector<8x128xf32> to vector<8x128xbf16>
    %c1 = arith.constant 1 : index
    %c0_14 = arith.constant 0 : index
    %c0_15 = arith.constant 0 : index
    %15 = vector.load %arg2[%c1, %c0_14, %c0_15] : memref<4x128x128xbf16, #tpu.memory_space<vmem>>, vector<1x128x128xbf16>
    %16 = vector.shape_cast %15 : vector<1x128x128xbf16> to vector<128x128xbf16>
    %cst_16 = arith.constant dense<0.000000e+00> : vector<8x128xf32>
    %17 = tpu.matmul %14, %16, %cst_16 {dimension_numbers = #tpu.dot_dimension_numbers<[1], [0], [0], [1], [0, 0, 1, 1], [], []>} : vector<8x128xbf16>, vector<128x128xbf16>, vector<8x128xf32> -> vector<8x128xf32>
    %c1_17 = arith.constant 1 : index
    %c0_18 = arith.constant 0 : index
    %c0_19 = arith.constant 0 : index
    %18 = vector.load %arg3[%c1_17, %c0_18, %c0_19] : memref<4x1x128xf32, #tpu.memory_space<vmem>>, vector<1x1x128xf32>
    %19 = vector.shape_cast %18 : vector<1x1x128xf32> to vector<1x128xf32>
    %20 = vector.broadcast %19 : vector<1x128xf32> to vector<8x128xf32>
    %21 = arith.addf %17, %20 : vector<8x128xf32>
    %22 = math.tanh %21 : vector<8x128xf32>
    %23 = arith.truncf %22 : vector<8x128xf32> to vector<8x128xbf16>
    %c2 = arith.constant 2 : index
    %c0_20 = arith.constant 0 : index
    %c0_21 = arith.constant 0 : index
    %24 = vector.load %arg2[%c2, %c0_20, %c0_21] : memref<4x128x128xbf16, #tpu.memory_space<vmem>>, vector<1x128x128xbf16>
    %25 = vector.shape_cast %24 : vector<1x128x128xbf16> to vector<128x128xbf16>
    %cst_22 = arith.constant dense<0.000000e+00> : vector<8x128xf32>
    %26 = tpu.matmul %23, %25, %cst_22 {dimension_numbers = #tpu.dot_dimension_numbers<[1], [0], [0], [1], [0, 0, 1, 1], [], []>} : vector<8x128xbf16>, vector<128x128xbf16>, vector<8x128xf32> -> vector<8x128xf32>
    %c2_23 = arith.constant 2 : index
    %c0_24 = arith.constant 0 : index
    %c0_25 = arith.constant 0 : index
    %27 = vector.load %arg3[%c2_23, %c0_24, %c0_25] : memref<4x1x128xf32, #tpu.memory_space<vmem>>, vector<1x1x128xf32>
    %28 = vector.shape_cast %27 : vector<1x1x128xf32> to vector<1x128xf32>
    %29 = vector.broadcast %28 : vector<1x128xf32> to vector<8x128xf32>
    %30 = arith.addf %26, %29 : vector<8x128xf32>
    %31 = math.tanh %30 : vector<8x128xf32>
    %32 = arith.truncf %31 : vector<8x128xf32> to vector<8x128xbf16>
    %c3 = arith.constant 3 : index
    %c0_26 = arith.constant 0 : index
    %c0_27 = arith.constant 0 : index
    %33 = vector.load %arg2[%c3, %c0_26, %c0_27] : memref<4x128x128xbf16, #tpu.memory_space<vmem>>, vector<1x128x128xbf16>
    %34 = vector.shape_cast %33 : vector<1x128x128xbf16> to vector<128x128xbf16>
    %cst_28 = arith.constant dense<0.000000e+00> : vector<8x128xf32>
    %35 = tpu.matmul %32, %34, %cst_28 {dimension_numbers = #tpu.dot_dimension_numbers<[1], [0], [0], [1], [0, 0, 1, 1], [], []>} : vector<8x128xbf16>, vector<128x128xbf16>, vector<8x128xf32> -> vector<8x128xf32>
    %c3_29 = arith.constant 3 : index
    %c0_30 = arith.constant 0 : index
    %c0_31 = arith.constant 0 : index
    %36 = vector.load %arg3[%c3_29, %c0_30, %c0_31] : memref<4x1x128xf32, #tpu.memory_space<vmem>>, vector<1x1x128xf32>
    %37 = vector.shape_cast %36 : vector<1x1x128xf32> to vector<1x128xf32>
    %38 = vector.broadcast %37 : vector<1x128xf32> to vector<8x128xf32>
    %39 = arith.addf %35, %38 : vector<8x128xf32>
    %40 = math.tanh %39 : vector<8x128xf32>
    %41 = vector.extract_strided_slice %40 {offsets = [0, 0], sizes = [8, 78], strides = [1, 1]} : vector<8x128xf32> to vector<8x78xf32>
    %c0_32 = arith.constant 0 : index
    %c0_33 = arith.constant 0 : index
    %42 = vector.load %arg4[%c0_32, %c0_33] : memref<8x78xf32, #tpu.memory_space<vmem>>, vector<8x78xf32>
    tpu.vector_store %arg4[%c0_32, %c0_33], %41 {strides = array<i32>} : memref<8x78xf32, #tpu.memory_space<vmem>>, vector<8x78xf32>,
    return
  }
  func.func @transform_0(%arg0: i32) -> (i32, i32) {
    %c0_i32 = arith.constant 0 : i32
    %c0_i32_0 = arith.constant 0 : i32
    return %arg0, %c0_i32 : i32, i32
  }
  func.func @transform_1(%arg0: i32) -> (i32, i32, i32) {
    %c0_i32 = arith.constant 0 : i32
    %c0_i32_0 = arith.constant 0 : i32
    %c0_i32_1 = arith.constant 0 : i32
    %c0_i32_2 = arith.constant 0 : i32
    return %c0_i32, %c0_i32_0, %c0_i32_1 : i32, i32, i32
  }
  func.func @transform_2(%arg0: i32) -> (i32, i32, i32) {
    %c0_i32 = arith.constant 0 : i32
    %c0_i32_0 = arith.constant 0 : i32
    %c0_i32_1 = arith.constant 0 : i32
    %c0_i32_2 = arith.constant 0 : i32
    return %c0_i32, %c0_i32_0, %c0_i32_1 : i32, i32, i32
  }
  func.func @transform_3(%arg0: i32) -> (i32, i32) {
    %c0_i32 = arith.constant 0 : i32
    %c0_i32_0 = arith.constant 0 : i32
    return %arg0, %c0_i32 : i32, i32
  }
}

</mosaic_0001>

<bundles_post_ra>
// kernel: tpu_custom_call.1
= control target key start
LH: loop header
LB: loop body
LE: loop exit
PB: predicated region body
PF: predicated region fallthrough
CT: control target
= control target key end

     0   :  { %8 = vsyncpa [#allocation4], 0  ;;  %s921_s0 = inlined_call_operand.hbm [shape: f32[8,78], index: 0, kind: input, shape index: {}]   ;;  %s922_s1 = inlined_call_operand.hbm [shape: bf16[4,128,128], index: 1, kind: input, shape index: {}]   ;;  %s923_s2 = inlined_call_operand.vmem [shape: f32[4,1,128], index: 2, kind: input, shape index: {}]   ;;  %s924_s3 = inlined_call_operand.hbm [shape: f32[8,78], index: 3, kind: output, shape index: {}]  }
   0x1   :  { %9 = vsyncpa [#allocation7], 0 }
   0x2   :  { %10 = vsyncpa [#allocation5], 0  ;;  %s798_s12 = smov [#allocation3]   ;;  %s799_s14 = smov [#allocation6]  }
   0x3   :  { %s17_s13 = sshll.u32 %s798_s12, 4  ;;  %s26_s15 = sshll.u32 %s799_s14, 4  ;;  %s18_s13 = int_to_ptr.vmem [resolvable:$true] %s17_s13  ;;  %s826_s15 = int_to_ptr.vmem [resolvable:$true] %s26_s15 }
   0x4   :  { %s726_s18 = scalar_lea.hbm %s921_s0, 128 }
   0x5   :  { %p727_p0 = scmp.ne.s32.totalorder %s921_s0, %s726_s18  ;;  %p730_p1 = scmp.lt.u32.totalorder %s726_s18, %s921_s0 }
   0x7   :  { %p732_p2 = pnand %p730_p1, %p727_p0 }
   0x9   :  { %735 = shalt.err (!%p732_p2)
}
   0xa   :  { %s736_s23 = scalar_lea.vmem %s18_s13, 128  ;;  %p741_p4 = scmp.lt.s32.totalorder %s18_s13, %s18_s13 }
   0xb   :  { %p737_p3 = scmp.ne.s32.totalorder %s18_s13, %s736_s23  ;;  %p742_p5 = scmp.lt.s32.totalorder %s736_s23, %s736_s23 }
   0xd   :  { %p743_p6 = por %p742_p5, %p741_p4 }
   0xf   :  { %p744_p7 = pnand %p743_p6, %p737_p3 }
  0x11   :  { %747 = shalt.err (!%p744_p7)
}
  0x12   :  { %20 = dma.hbm_to_vmem [thread:$0]  %s921_s0, 128, %s18_s13, [#allocation4]  }
  0x13   :  { %s748_s28 = scalar_lea.hbm %s922_s1, 4096 }
  0x14   :  { %p749_p8 = scmp.ne.s32.totalorder %s922_s1, %s748_s28  ;;  %p752_p9 = scmp.lt.u32.totalorder %s748_s28, %s922_s1 }
  0x16   :  { %p754_p10 = pnand %p752_p9, %p749_p8 }
  0x18   :  { %757 = shalt.err (!%p754_p10)
}
  0x19   :  { %s758_s6 = scalar_lea.vmem %s826_s15, 4096  ;;  %p763_p12 = scmp.lt.s32.totalorder %s826_s15, %s826_s15 }
  0x1a   :  { %p759_p11 = scmp.ne.s32.totalorder %s826_s15, %s758_s6  ;;  %p764_p13 = scmp.lt.s32.totalorder %s758_s6, %s758_s6 }
  0x1c   :  { %p765_p0 = por %p764_p13, %p763_p12 }
  0x1e   :  { %p766_p1 = pnand %p765_p0, %p759_p11 }
  0x20   :  { %769 = shalt.err (!%p766_p1)
}
  0x21   :  { %s800_s0 = smov 64   ;;  %s801_s7 = smov 4  }
  0x22   :  { %32 = dma.hbm_to_vmem [thread:$0]  %s922_s1, 4096, %s826_s15, [#allocation7], %s800_s0, %s800_s0, %s801_s7  }
  0x23   :  { %792 = dma.done.wait [#allocation4], 128  }
  0x24   :  { %793 = vsyncadd [#allocation4], 4294967168 }
  0x25   :  { %794 = dma.done.wait [#allocation7], 4096  }
  0x26   :  { %795 = vsyncadd [#allocation7], 4294963200  ;;  %v802_v0 = vmov 0.0   ;;  %vm803_vm0 = vmmov 0   ;;  %v804_v1 = vmov 0   ;;  %v686_v2 = vld [vmem:[#allocation6] sm:$0xff]  }
  0x27   :  { %598 = vmatprep.subr.bf16.mxu0 %v802_v0  ;;  %614 = vmatprep.mubr.msk.bf16.mxu0 %vm803_vm0, %v802_v0  ;;  %42 = vst [vmem:[#allocation2] sm:$0xf] %v804_v1  ;;  %v687_v3 = vld [vmem:[#allocation6 + $0x8] sm:$0xff]   ;;  %v688_v4 = vld [vmem:[#allocation6 + $0x10] sm:$0xff]   ;;  %v43_v5 = vld [vmem:[#allocation3] sm:$0xff]  ;;  %vm45_vm1 = vcmask 633856  }
  0x28   :  { %618 = vmatprep.subr.bf16.mxu1 %v802_v0  ;;  %634 = vmatprep.mubr.msk.bf16.mxu1 %vm803_vm0, %v802_v0  ;;  %v44_v6 = vpack.c.bf16 %v43_v5, %v43_v5  ;;  %v694_v7 = vld [vmem:[#allocation6 + $0x40] sm:$0xff]   ;;  %v689_v8 = vld [vmem:[#allocation6 + $0x18] sm:$0xff]   ;;  %v695_v9 = vld [vmem:[#allocation6 + $0x48] sm:$0xff]   ;;  %s805_s17 = smov [#allocation8]   ;;  %vm505_vm2 = vcmask 637952  }
  0x29   :  { %599 = vmatpush3.bf16.msra.mxu0 %v686_v2  ;;  %619 = vmatpush3.bf16.msra.mxu1 %v694_v7  ;;  %v690_v10 = vld [vmem:[#allocation6 + $0x20] sm:$0xff]   ;;  %v696_v11 = vld [vmem:[#allocation6 + $0x50] sm:$0xff]   ;;  %v691_v12 = vld [vmem:[#allocation6 + $0x28] sm:$0xff]   ;;  %s513_s18 = sshll.u32 %s805_s17, 4  ;;  %s514_s18 = int_to_ptr.vmem [resolvable:$true] %s513_s18 }
  0x2a   :  { %600 = vmatprep.subr.bf16.mxu0 %v802_v0  ;;  %46 = vst.msk [vmem:[#allocation2] sm:$0xf] %vm45_vm1, %v44_v6  ;;  %620 = vmatprep.subr.bf16.mxu1 %v802_v0  ;;  %v697_v13 = vld [vmem:[#allocation6 + $0x58] sm:$0xff]   ;;  %v692_v14 = vld [vmem:[#allocation6 + $0x30] sm:$0xff]   ;;  %v698_v17 = vld [vmem:[#allocation6 + $0x60] sm:$0xff]   ;;  %s770_s19 = scalar_lea.vmem %s514_s18, 128  ;;  %p775_p3 = scmp.lt.s32.totalorder %s514_s18, %s514_s18 }
  0x2b   :  { %v693_v15 = vld [vmem:[#allocation6 + $0x38] sm:$0xff]   ;;  %v699_v18 = vld [vmem:[#allocation6 + $0x68] sm:$0xff]   ;;  %v700_v19 = vld [vmem:[#allocation6 + $0x70] sm:$0xff]   ;;  %p771_p2 = scmp.ne.s32.totalorder %s514_s18, %s770_s19  ;;  %p776_p4 = scmp.lt.s32.totalorder %s770_s19, %s770_s19 }
  0x2c   :  { %v701_v20 = vld [vmem:[#allocation6 + $0x78] sm:$0xff]   ;;  %v702_v21 = vld [vmem:[#allocation6 + $0x80] sm:$0xff]   ;;  %v703_v22 = vld [vmem:[#allocation6 + $0x88] sm:$0xff]  }
  0x2d   :  { %601 = vmatpush3.bf16.msra.mxu0 %v687_v3  ;;  %621 = vmatpush3.bf16.msra.mxu1 %v695_v9  ;;  %v704_v23 = vld [vmem:[#allocation6 + $0x90] sm:$0xff]   ;;  %v705_v24 = vld [vmem:[#allocation6 + $0x98] sm:$0xff]   ;;  %v706_v33 = vld [vmem:[#allocation6 + $0xa0] sm:$0xff]   ;;  %p777_p5 = por %p776_p4, %p775_p3 }
  0x2e   :  { %602 = vmatprep.subr.bf16.mxu0 %v802_v0  ;;  %622 = vmatprep.subr.bf16.mxu1 %v802_v0  ;;  %v523_v25 = vld [vmem:[%s923_s2] ss:$0 sm:$0xff]  ;;  %v707_v34 = vld [vmem:[#allocation6 + $0xa8] sm:$0xff]   ;;  %v709_v36 = vld [vmem:[#allocation6 + $0xb8] sm:$0xff]  }
  0x2f   :  { %v708_v35 = vld [vmem:[#allocation6 + $0xb0] sm:$0xff]   ;;  %v710_v37 = vld [vmem:[#allocation6 + $0xc0] sm:$0xff]   ;;  %v711_v38 = vld [vmem:[#allocation6 + $0xc8] sm:$0xff]   ;;  %p778_p6 = pnand %p777_p5, %p771_p2 }
  0x30   :  { %v712_v39 = vld [vmem:[#allocation6 + $0xd0] sm:$0xff]   ;;  %v713_v40 = vld [vmem:[#allocation6 + $0xd8] sm:$0xff]   ;;  %v714_v49 = vld [vmem:[#allocation6 + $0xe0] sm:$0xff]  }
  0x31   :  { %603 = vmatpush3.bf16.msra.mxu0 %v688_v4  ;;  %623 = vmatpush3.bf16.msra.mxu1 %v696_v11  ;;  %v47_v16 = vld [vmem:[#allocation2] sm:$0xf]  ;;  %v715_v50 = vld [vmem:[#allocation6 + $0xe8] sm:$0xff]   ;;  %v717_v52 = vld [vmem:[#allocation6 + $0xf8] sm:$0xff]  }
  0x32   :  { %604 = vmatprep.subr.bf16.mxu0 %v802_v0  ;;  %624 = vmatprep.subr.bf16.mxu1 %v802_v0  ;;  %v533_v41 = vld [vmem:[%s923_s2 + $0x1] ss:$0 sm:$0xff]  ;;  %v543_v53 = vld [vmem:[%s923_s2 + $0x2] ss:$0 sm:$0xff]  ;;  %v553_v61 = vld [vmem:[%s923_s2 + $0x3] ss:$0 sm:$0xff] }
  0x33   :  { %v716_v51 = vld [vmem:[#allocation6 + $0xf0] sm:$0xff]  }
  0x35   :  { %605 = vmatpush3.bf16.msra.mxu0 %v689_v8  ;;  %625 = vmatpush3.bf16.msra.mxu1 %v697_v13 }
  0x36   :  { %606 = vmatprep.subr.bf16.mxu0 %v802_v0  ;;  %626 = vmatprep.subr.bf16.mxu1 %v802_v0 }
  0x39   :  { %607 = vmatpush3.bf16.msra.mxu0 %v690_v10  ;;  %627 = vmatpush3.bf16.msra.mxu1 %v698_v17 }
  0x3a   :  { %608 = vmatprep.subr.bf16.mxu0 %v802_v0  ;;  %628 = vmatprep.subr.bf16.mxu1 %v802_v0 }
  0x3d   :  { %609 = vmatpush3.bf16.msra.mxu0 %v691_v12  ;;  %629 = vmatpush3.bf16.msra.mxu1 %v699_v18 }
  0x3e   :  { %610 = vmatprep.subr.bf16.mxu0 %v802_v0  ;;  %630 = vmatprep.subr.bf16.mxu1 %v802_v0 }
  0x41   :  { %611 = vmatpush3.bf16.msra.mxu0 %v692_v14  ;;  %631 = vmatpush3.bf16.msra.mxu1 %v700_v19 }
  0x42   :  { %612 = vmatprep.subr.bf16.mxu0 %v802_v0  ;;  %632 = vmatprep.subr.bf16.mxu1 %v802_v0 }
  0x45   :  { %613 = vmatpush3.bf16.msra.mxu0 %v693_v15  ;;  %633 = vmatpush3.bf16.msra.mxu1 %v701_v20 }
  0x46   :  { %638 = vmatprep.subr.bf16.mxu0 %v802_v0  ;;  %658 = vmatprep.subr.bf16.mxu1 %v802_v0 }
  0x48   :  { %615 = vmatmul.mubr.bf16.vlgmr.msra.gmra.mrb[0].mxu0 %v47_v16 }
  0x49   :  { %654 = vmatprep.mubr.msk.bf16.mxu0 %vm803_vm0, %v802_v0  ;;  %639 = vmatpush3.bf16.msra.mxu0 %v702_v21 }
  0x4a   :  { %640 = vmatprep.subr.bf16.mxu0 %v802_v0 }
  0x4d   :  { %641 = vmatpush3.bf16.msra.mxu0 %v703_v22 }
  0x4e   :  { %642 = vmatprep.subr.bf16.mxu0 %v802_v0 }
  0x51   :  { %643 = vmatpush3.bf16.msra.mxu0 %v704_v23 }
  0x52   :  { %644 = vmatprep.subr.bf16.mxu0 %v802_v0 }
  0x55   :  { %645 = vmatpush3.bf16.msra.mxu0 %v705_v24 }
  0x56   :  { %646 = vmatprep.subr.bf16.mxu0 %v802_v0 }
  0x59   :  { %647 = vmatpush3.bf16.msra.mxu0 %v706_v33 }
  0x5a   :  { %648 = vmatprep.subr.bf16.mxu0 %v802_v0 }
  0x5d   :  { %649 = vmatpush3.bf16.msra.mxu0 %v707_v34 }
  0x5e   :  { %650 = vmatprep.subr.bf16.mxu0 %v802_v0 }
  0x61   :  { %651 = vmatpush3.bf16.msra.mxu0 %v708_v35 }
  0x62   :  { %652 = vmatprep.subr.bf16.mxu0 %v802_v0 }
  0x65   :  { %653 = vmatpush3.bf16.msra.mxu0 %v709_v36 }
 0x11b   :  { %v153_v26 = vpop.f32.mrb[0].mxu0 }
 0x11c   :  { %v154_v27 = vadd.f32 %v523_v25, %v153_v26  ;;  %v616_v28 = vpop.f32.mrb[1].mxu0 }
 0x11d   :  { %v156_v29 = vpop.f32.mrb[2].mxu0 }
 0x11e   :  { %718 = vtanh.f32 %v154_v27  ;;  %v617_v30 = vpop.f32.mrb[3].mxu0 }
 0x128   :  { %v719_v31 = vpop.eup %718 }
 0x129   :  { %v160_v32 = vpack.c.bf16 %v719_v31, %v719_v31 }
 0x12b   :  { %635 = vmatmul.mubr.bf16.vlgmr.msra.gmra.mrb[0].mxu1 %v160_v32 }
 0x12c   :  { %674 = vmatprep.mubr.msk.bf16.mxu1 %vm803_vm0, %v802_v0  ;;  %659 = vmatpush3.bf16.msra.mxu1 %v710_v37 }
 0x12d   :  { %660 = vmatprep.subr.bf16.mxu1 %v802_v0 }
 0x130   :  { %661 = vmatpush3.bf16.msra.mxu1 %v711_v38 }
 0x131   :  { %662 = vmatprep.subr.bf16.mxu1 %v802_v0 }
 0x134   :  { %663 = vmatpush3.bf16.msra.mxu1 %v712_v39 }
 0x135   :  { %664 = vmatprep.subr.bf16.mxu1 %v802_v0 }
 0x138   :  { %665 = vmatpush3.bf16.msra.mxu1 %v713_v40 }
 0x139   :  { %666 = vmatprep.subr.bf16.mxu1 %v802_v0 }
 0x13c   :  { %667 = vmatpush3.bf16.msra.mxu1 %v714_v49 }
 0x13d   :  { %668 = vmatprep.subr.bf16.mxu1 %v802_v0 }
 0x140   :  { %669 = vmatpush3.bf16.msra.mxu1 %v715_v50 }
 0x141   :  { %670 = vmatprep.subr.bf16.mxu1 %v802_v0 }
 0x144   :  { %671 = vmatpush3.bf16.msra.mxu1 %v716_v51 }
 0x145   :  { %672 = vmatprep.subr.bf16.mxu1 %v802_v0 }
 0x148   :  { %673 = vmatpush3.bf16.msra.mxu1 %v717_v52 }
 0x1fe   :  { %v268_v42 = vpop.f32.mrb[0].mxu1 }
 0x1ff   :  { %v269_v43 = vadd.f32 %v533_v41, %v268_v42  ;;  %v636_v44 = vpop.f32.mrb[1].mxu1 }
 0x200   :  { %v271_v45 = vpop.f32.mrb[2].mxu1 }
 0x201   :  { %720 = vtanh.f32 %v269_v43  ;;  %v637_v46 = vpop.f32.mrb[3].mxu1 }
 0x20b   :  { %v721_v47 = vpop.eup %720 }
 0x20c   :  { %v275_v48 = vpack.c.bf16 %v721_v47, %v721_v47 }
 0x20e   :  { %655 = vmatmul.mubr.bf16.vlgmr.msra.gmra.mrb[4].mxu0 %v275_v48 }
 0x2e1   :  { %v383_v54 = vpop.f32.mrb[4].mxu0 }
 0x2e2   :  { %v384_v55 = vadd.f32 %v543_v53, %v383_v54  ;;  %v656_v56 = vpop.f32.mrb[5].mxu0 }
 0x2e3   :  { %v386_v57 = vpop.f32.mrb[6].mxu0 }
 0x2e4   :  { %722 = vtanh.f32 %v384_v55  ;;  %v657_v58 = vpop.f32.mrb[7].mxu0 }
 0x2ee   :  { %v723_v59 = vpop.eup %722 }
 0x2ef   :  { %v390_v60 = vpack.c.bf16 %v723_v59, %v723_v59 }
 0x2f1   :  { %675 = vmatmul.mubr.bf16.vlgmr.msra.gmra.mrb[4].mxu1 %v390_v60 }
 0x3c4   :  { %v498_v62 = vpop.f32.mrb[4].mxu1 }
 0x3c5   :  { %v499_v63 = vadd.f32 %v553_v61, %v498_v62  ;;  %v676_v0 = vpop.f32.mrb[5].mxu1 }
 0x3c6   :  { %v501_v1 = vpop.f32.mrb[6].mxu1 }
 0x3c7   :  { %724 = vtanh.f32 %v499_v63  ;;  %v677_v2 = vpop.f32.mrb[7].mxu1 }
 0x3d1   :  { %v725_v3 = vpop.eup %724 }
 0x3d2   :  { %506 = vst.msk [vmem:[#allocation8] sm:$0xff] %vm505_vm2, %v725_v3 }
 0x3d3   :  { %781 = shalt.err (!%p778_p6)
}
 0x3d4   :  { %s782_s21 = scalar_lea.hbm %s924_s3, 128 }
 0x3d5   :  { %p783_p7 = scmp.ne.s32.totalorder %s924_s3, %s782_s21  ;;  %p786_p8 = scmp.lt.u32.totalorder %s782_s21, %s924_s3 }
 0x3d7   :  { %p788_p9 = pnand %p786_p8, %p783_p7 }
 0x3d9   :  { %791 = shalt.err (!%p788_p9)
}
 0x3da   :  { %516 = dma.vmem_to_hbm [thread:$0]  %s514_s18, 128, %s924_s3, [#allocation5]  }
 0x3db   :  { %796 = dma.done.wait [#allocation5], 128  }
 0x3dc   :  { %797 = vsyncadd [#allocation5], 4294967168 }
 0x3dd   :  { %520 = vsyncpa [#allocation4], 1 }
 0x3de   :  { %521 = vsyncpa [#allocation7], 1 }
 0x3df   :  { %522 = vsyncpa [#allocation5], 1 }

</bundles_post_ra>
